<compile_context>
chip_gen: v5e
topology: v5e:2x2
jax: 0.10.0
libtpu: 0.0.40
codegen_flags: <defaults>
</compile_context>

<pallas_src>
import functools

import jax
import jax.numpy as jnp
from jax.experimental import pallas as pl
from jax.experimental.pallas import tpu as pltpu


def _skipgram_kernel(x_ref, w_ref, b_ref, out_ref, m_ref, l_ref, mt_ref):
    """Grid step j handles vocab columns [j*TN, (j+1)*TN).

    x_ref:   (B, D)          bf16 VMEM  gathered context embeddings (resident across grid)
    w_ref:   (D, TN)         bf16 VMEM  streamed tile of the transposed linear weight
    b_ref:   (T, 1, TN)      f32  VMEM  resident bias, one row per vocab tile
    out_ref: (T, B, TN)      f32  VMEM  resident output block (exp values, then softmax)
    m_ref:   (B, 1)          f32  VMEM  running row max (online softmax)
    l_ref:   (B, 1)          f32  VMEM  running sum of exp (online softmax)
    mt_ref:  (T, B, 1)       f32  VMEM  running-max snapshot at the time tile j was produced
    """
    j = pl.program_id(0)
    n_tiles = pl.num_programs(0)

    @pl.when(j == 0)
    def _init():
        m_ref[...] = jnp.full(m_ref.shape, -jnp.inf, dtype=m_ref.dtype)
        l_ref[...] = jnp.zeros_like(l_ref)

    # Linear layer on the MXU: bf16 x bf16 -> f32 accumulation, plus resident bias slice.
    logits = jnp.dot(x_ref[...], w_ref[...], preferred_element_type=jnp.float32)
    logits = logits + b_ref[j]                                            # (B, TN), f32

    # Online softmax update: the exp work happens here, overlapped with the next W DMA.
    m_old = m_ref[...]                                                    # (B, 1)
    m_new = jnp.maximum(m_old, jnp.max(logits, axis=1, keepdims=True))    # (B, 1)
    p = jnp.exp(logits - m_new)                                           # (B, TN)
    l_ref[...] = l_ref[...] * jnp.exp(m_old - m_new) + jnp.sum(p, axis=1, keepdims=True)
    m_ref[...] = m_new
    mt_ref[j] = m_new

    # Dense (8, k*128) unmasked store; the leading index is just an address offset.
    out_ref[j] = p

    # Finalize on the last tile: only a per-tile VPU multiply (exact reciprocal, once/row).
    @pl.when(j == n_tiles - 1)
    def _finalize():
        m_final = m_ref[...]                                              # (B, 1)
        inv_denom = 1.0 / l_ref[...]                                      # (B, 1), exact

        def _scale_tile(t, carry):
            out_ref[t] = out_ref[t] * (jnp.exp(mt_ref[t] - m_final) * inv_denom)
            return carry

        jax.lax.fori_loop(0, n_tiles, _scale_tile, 0)


def prepare_skipgram_params(emb_w, lin_w, lin_b, compute_dtype=jnp.bfloat16):
    """One-time layout/dtype prep (kept out of the per-call hot path):
    torch nn.Linear weight (N, D) -> MXU/DMA-friendly (D, N) bf16; bias -> (1, N) f32."""
    return {
        "emb_w": jnp.asarray(emb_w, jnp.float32),
        "w_t": jnp.asarray(lin_w, jnp.float32).T.astype(compute_dtype),
        "bias": jnp.asarray(lin_b, jnp.float32).reshape(1, -1),
    }


def _pick_tile_n(n, target=2048):
    """Largest multiple of 128 dividing n, capped at `target` (big, lane-dense W tiles)."""
    if n % 128 != 0:
        # Streaming disabled (whole weight resident); only acceptable for small vocabs —
        # the wrapper guards against a VMEM blow-up below.
        return n
    if n <= target:
        return n
    tn = target - (target % 128)
    while n % tn:
        tn -= 128
    return max(tn, 128)


@functools.partial(jax.jit, static_argnames=("tile_n",))
def skipgram_forward(context_items, emb_w, w_t, bias, tile_n=None):
    """softmax(embedding[context_items] @ W^T + b) -> (B, N) f32 scores in [0, 1]."""
    d, n = w_t.shape
    compute_dtype = w_t.dtype
    itemsize = jnp.dtype(compute_dtype).itemsize
    if tile_n is None:
        tile_n = _pick_tile_n(n)
    assert n % tile_n == 0, "num_items must be divisible by tile_n"
    n_tiles = n // tile_n

    # Explicit guard: if streaming is disabled (single tile) the whole weight must fit.
    if n_tiles == 1 and d * n * itemsize > 32 * 2**20:
        raise ValueError(
            "vocab too large for a single resident weight tile; pad num_items to a "
            "multiple of 128 so the vocab axis can be streamed.")

    # Pad the batch to a sublane multiple (8) so vector ops / stores stay dense.
    b0 = context_items.shape[0]
    pad = (-b0) % 8
    if pad:
        context_items = jnp.concatenate(
            [context_items, jnp.zeros((pad,), dtype=context_items.dtype)])
    b = b0 + pad

    # Embedding lookup stays outside the kernel: only the B needed rows are gathered;
    # the full (N, D) table never travels HBM -> VMEM.
    x = jnp.take(emb_w, context_items.astype(jnp.int32), axis=0).astype(compute_dtype)

    # Resident bias: one (1, tile_n) row per vocab tile, loaded once.
    bias_tiles = bias.reshape(n_tiles, 1, tile_n)

    vmem_bytes = (b * n * 4                       # resident output block
                  + b * d * itemsize              # resident gathered embeddings
                  + n_tiles * 8 * tile_n * 4      # resident bias (sublane-padded)
                  + 2 * d * tile_n * itemsize     # double-buffered W stream
                  + (n_tiles + 2) * b * 128 * 4   # lane-padded (B,1) scratch
                  + (1 << 20))                    # slack
    vmem_limit = int(min(max(vmem_bytes, 16 * 2**20), 48 * 2**20))

    out3 = pl.pallas_call(
        _skipgram_kernel,
        out_shape=jax.ShapeDtypeStruct((n_tiles, b, tile_n), jnp.float32),
        grid_spec=pltpu.PrefetchScalarGridSpec(
            num_scalar_prefetch=0,
            grid=(n_tiles,),
            in_specs=[
                pl.BlockSpec((b, d), lambda j: (0, 0)),                   # x: resident
                pl.BlockSpec((d, tile_n), lambda j: (0, j)),              # W: streamed
                pl.BlockSpec((n_tiles, 1, tile_n), lambda j: (0, 0, 0)),  # bias: resident
            ],
            out_specs=pl.BlockSpec((n_tiles, b, tile_n), lambda j: (0, 0, 0)),
            scratch_shapes=[
                pltpu.VMEM((b, 1), jnp.float32),            # running max
                pltpu.VMEM((b, 1), jnp.float32),            # running sum of exp
                pltpu.VMEM((n_tiles, b, 1), jnp.float32),   # per-tile max snapshots
            ],
        ),
        compiler_params=pltpu.CompilerParams(
            # Vocab axis is a softmax-reduction axis with a resident output block ->
            # it must stay sequential ("arbitrary").
            dimension_semantics=("arbitrary",),
            vmem_limit_bytes=vmem_limit,
        ),
        cost_estimate=pl.CostEstimate(
            flops=2 * b * d * n,
            transcendentals=b * n,
            bytes_accessed=(d * n * itemsize + b * d * itemsize + n * 4 + b * n * 4),
        ),
    )(x, w_t, bias_tiles)

    # (T, B, TN) -> (B, N): layout fix outside the kernel (keeps in-kernel stores dense).
    out = jnp.swapaxes(out3, 0, 1).reshape(b, n)
    return out[:b0]


if __name__ == "__main__":
    # Small deterministic config; tile_n=512 -> 4 vocab tiles -> grid of 4.
    num_items = 2048
    embedding_dim = 128
    context_size = 2      # unused by forward(); kept for module fidelity
    batch = 8

    key = jax.random.PRNGKey(0)
    k1, k2, k3, k4 = jax.random.split(key, 4)

    # nn.Embedding default init: N(0, 1)
    emb_w = jax.random.normal(k1, (num_items, embedding_dim), dtype=jnp.float32)
    # nn.Linear default init: U(-1/sqrt(in_features), +1/sqrt(in_features))
    bound = 1.0 / float(embedding_dim) ** 0.5
    lin_w = jax.random.uniform(k2, (num_items, embedding_dim), jnp.float32, -bound, bound)
    lin_b = jax.random.uniform(k3, (num_items,), jnp.float32, -bound, bound)

    context_items = jax.random.randint(k4, (batch,), 0, num_items, dtype=jnp.int32)

    params = prepare_skipgram_params(emb_w, lin_w, lin_b)
    out = skipgram_forward(context_items, params["emb_w"], params["w_t"],
                           params["bias"], tile_n=512)
    out = jax.block_until_ready(out)

    # Pure-JAX float32 reference (PyTorch semantics).
    x_ref = emb_w[context_items]                 # (B, D)
    logits_ref = x_ref @ lin_w.T + lin_b         # (B, N)
    ref = jax.nn.softmax(logits_ref, axis=1)

    assert out.shape == (batch, num_items)
    assert bool(jnp.all(jnp.isfinite(out)))
    # bf16 matmul operands -> loosened element tolerance vs the f32 reference.
    assert jnp.allclose(out, ref, atol=2e-3, rtol=2e-2), "mismatch vs reference"
    # Exact reciprocal in the epilogue -> rows sum to 1 to f32 precision.
    assert jnp.allclose(jnp.sum(out, axis=1), 1.0, atol=1e-3), "rows must sum to 1"

    print("KERNEL_OK")
</pallas_src>

<mosaic_0001>
module attributes {stable_mosaic.version = 11 : i64} {
  func.func @_skipgram_kernel(%arg0: i32, %arg1: memref<8x128xbf16, #tpu.memory_space<vmem>>, %arg2: memref<128x512xbf16, #tpu.memory_space<vmem>>, %arg3: memref<4x1x512xf32, #tpu.memory_space<vmem>>, %arg4: memref<4x8x512xf32, #tpu.memory_space<vmem>>, %arg5: memref<8x1xf32, #tpu.memory_space<vmem>>, %arg6: memref<8x1xf32, #tpu.memory_space<vmem>>, %arg7: memref<4x8x1xf32, #tpu.memory_space<vmem>>) attributes {dimension_semantics = [#tpu.dimension_semantics<arbitrary>], iteration_bounds = array<i64: 4>, scalar_prefetch = 0 : i64, scratch_operands = 3 : i64, tpu.core_type = #tpu.core_type<tc>, window_params = [{pipeline_mode = #tpu.pipeline_mode<synchronous>, transform_indices = @transform_0, window_bounds = array<i64: 8, 128>}, {transform_indices = @transform_1, window_bounds = array<i64: 128, 512>}, {pipeline_mode = #tpu.pipeline_mode<synchronous>, transform_indices = @transform_2, window_bounds = array<i64: 4, 1, 512>}, {pipeline_mode = #tpu.pipeline_mode<synchronous>, transform_indices = @transform_3, window_bounds = array<i64: 4, 8, 512>}]} {
    %c0_i32 = arith.constant 0 : i32
    %0 = arith.cmpi eq, %arg0, %c0_i32 : i32
    %1 = arith.extui %0 : i1 to i32
    %c0_i32_0 = arith.constant 0 : i32
    %2 = arith.cmpi ne, %1, %c0_i32_0 : i32
    scf.if %2 {
      %cst_21 = arith.constant 0xFF800000 : f32
      %38 = vector.broadcast %cst_21 : f32 to vector<8x1xf32>
      %c0_22 = arith.constant 0 : index
      %c0_23 = arith.constant 0 : index
      %39 = vector.load %arg5[%c0_22, %c0_23] : memref<8x1xf32, #tpu.memory_space<vmem>>, vector<8x1xf32>
      tpu.vector_store %arg5[%c0_22, %c0_23], %38 {strides = array<i32>} : memref<8x1xf32, #tpu.memory_space<vmem>>, vector<8x1xf32>,
      %cst_24 = arith.constant 0.000000e+00 : f32
      %40 = vector.broadcast %cst_24 : f32 to vector<8x1xf32>
      %c0_25 = arith.constant 0 : index
      %c0_26 = arith.constant 0 : index
      %41 = vector.load %arg6[%c0_25, %c0_26] : memref<8x1xf32, #tpu.memory_space<vmem>>, vector<8x1xf32>
      tpu.vector_store %arg6[%c0_25, %c0_26], %40 {strides = array<i32>} : memref<8x1xf32, #tpu.memory_space<vmem>>, vector<8x1xf32>,
    } else {
    }
    %c0 = arith.constant 0 : index
    %c0_1 = arith.constant 0 : index
    %3 = vector.load %arg1[%c0, %c0_1] : memref<8x128xbf16, #tpu.memory_space<vmem>>, vector<8x128xbf16>
    %c0_2 = arith.constant 0 : index
    %c0_3 = arith.constant 0 : index
    %4 = vector.load %arg2[%c0_2, %c0_3] : memref<128x512xbf16, #tpu.memory_space<vmem>>, vector<128x512xbf16>
    %cst = arith.constant dense<0.000000e+00> : vector<8x512xf32>
    %5 = tpu.matmul %3, %4, %cst {dimension_numbers = #tpu.dot_dimension_numbers<[1], [0], [0], [1], [0, 0, 1, 1], [], []>} : vector<8x128xbf16>, vector<128x512xbf16>, vector<8x512xf32> -> vector<8x512xf32>
    %6 = arith.index_cast %arg0 : i32 to index
    %c0_4 = arith.constant 0 : index
    %c0_5 = arith.constant 0 : index
    %7 = vector.load %arg3[%6, %c0_4, %c0_5] : memref<4x1x512xf32, #tpu.memory_space<vmem>>, vector<1x1x512xf32>
    %8 = vector.shape_cast %7 : vector<1x1x512xf32> to vector<1x512xf32>
    %9 = vector.broadcast %8 : vector<1x512xf32> to vector<8x512xf32>
    %10 = arith.addf %5, %9 : vector<8x512xf32>
    %c0_6 = arith.constant 0 : index
    %c0_7 = arith.constant 0 : index
    %11 = vector.load %arg5[%c0_6, %c0_7] : memref<8x1xf32, #tpu.memory_space<vmem>>, vector<8x1xf32>
    %cst_8 = arith.constant dense<0xFF800000> : vector<8xf32>
    %12 = vector.multi_reduction <maximumf>, %10, %cst_8 [1] : vector<8x512xf32> to vector<8xf32>
    %13 = vector.shape_cast %12 : vector<8xf32> to vector<8x1xf32>
    %14 = arith.maximumf %11, %13 : vector<8x1xf32>
    %15 = vector.broadcast %14 : vector<8x1xf32> to vector<8x512xf32>
    %16 = arith.subf %10, %15 : vector<8x512xf32>
    %17 = math.exp %16 : vector<8x512xf32>
    %c0_9 = arith.constant 0 : index
    %c0_10 = arith.constant 0 : index
    %18 = vector.load %arg6[%c0_9, %c0_10] : memref<8x1xf32, #tpu.memory_space<vmem>>, vector<8x1xf32>
    %19 = arith.subf %11, %14 : vector<8x1xf32>
    %20 = math.exp %19 : vector<8x1xf32>
    %21 = arith.mulf %18, %20 : vector<8x1xf32>
    %cst_11 = arith.constant dense<0.000000e+00> : vector<8xf32>
    %22 = vector.multi_reduction <add>, %17, %cst_11 [1] : vector<8x512xf32> to vector<8xf32>
    %23 = vector.shape_cast %22 : vector<8xf32> to vector<8x1xf32>
    %24 = arith.addf %21, %23 : vector<8x1xf32>
    %c0_12 = arith.constant 0 : index
    %c0_13 = arith.constant 0 : index
    %25 = vector.load %arg6[%c0_12, %c0_13] : memref<8x1xf32, #tpu.memory_space<vmem>>, vector<8x1xf32>
    tpu.vector_store %arg6[%c0_12, %c0_13], %24 {strides = array<i32>} : memref<8x1xf32, #tpu.memory_space<vmem>>, vector<8x1xf32>,
    %c0_14 = arith.constant 0 : index
    %c0_15 = arith.constant 0 : index
    %26 = vector.load %arg5[%c0_14, %c0_15] : memref<8x1xf32, #tpu.memory_space<vmem>>, vector<8x1xf32>
    tpu.vector_store %arg5[%c0_14, %c0_15], %14 {strides = array<i32>} : memref<8x1xf32, #tpu.memory_space<vmem>>, vector<8x1xf32>,
    %27 = arith.index_cast %arg0 : i32 to index
    %c0_16 = arith.constant 0 : index
    %c0_17 = arith.constant 0 : index
    %28 = vector.load %arg7[%27, %c0_16, %c0_17] : memref<4x8x1xf32, #tpu.memory_space<vmem>>, vector<1x8x1xf32>
    %29 = vector.shape_cast %28 : vector<1x8x1xf32> to vector<8x1xf32>
    %30 = vector.shape_cast %14 : vector<8x1xf32> to vector<1x8x1xf32>
    tpu.vector_store %arg7[%27, %c0_16, %c0_17], %30 {strides = array<i32>} : memref<4x8x1xf32, #tpu.memory_space<vmem>>, vector<1x8x1xf32>,
    %31 = arith.index_cast %arg0 : i32 to index
    %c0_18 = arith.constant 0 : index
    %c0_19 = arith.constant 0 : index
    %32 = vector.load %arg4[%31, %c0_18, %c0_19] : memref<4x8x512xf32, #tpu.memory_space<vmem>>, vector<1x8x512xf32>
    %33 = vector.shape_cast %32 : vector<1x8x512xf32> to vector<8x512xf32>
    %34 = vector.shape_cast %17 : vector<8x512xf32> to vector<1x8x512xf32>
    tpu.vector_store %arg4[%31, %c0_18, %c0_19], %34 {strides = array<i32>} : memref<4x8x512xf32, #tpu.memory_space<vmem>>, vector<1x8x512xf32>,
    %c3_i32 = arith.constant 3 : i32
    %35 = arith.cmpi eq, %arg0, %c3_i32 : i32
    %36 = arith.extui %35 : i1 to i32
    %c0_i32_20 = arith.constant 0 : i32
    %37 = arith.cmpi ne, %36, %c0_i32_20 : i32
    scf.if %37 {
      %c0_21 = arith.constant 0 : index
      %c0_22 = arith.constant 0 : index
      %38 = vector.load %arg5[%c0_21, %c0_22] : memref<8x1xf32, #tpu.memory_space<vmem>>, vector<8x1xf32>
      %c0_23 = arith.constant 0 : index
      %c0_24 = arith.constant 0 : index
      %39 = vector.load %arg6[%c0_23, %c0_24] : memref<8x1xf32, #tpu.memory_space<vmem>>, vector<8x1xf32>
      %cst_25 = arith.constant 1.000000e+00 : f32
      %40 = vector.broadcast %cst_25 : f32 to vector<8x1xf32>
      %41 = arith.divf %40, %39 : vector<8x1xf32>
      %c0_i32_26 = arith.constant 0 : i32
      %c4_i32 = arith.constant 4 : i32
      %42 = arith.addi %c0_i32_26, %c4_i32 : i32
      %c1_i32 = arith.constant 1 : i32
      scf.for %arg8 = %c0_i32_26 to %42 step %c1_i32  : i32 {
        %43 = arith.index_cast %arg8 : i32 to index
        %c0_28 = arith.constant 0 : index
        %c0_29 = arith.constant 0 : index
        %44 = vector.load %arg4[%43, %c0_28, %c0_29] : memref<4x8x512xf32, #tpu.memory_space<vmem>>, vector<1x8x512xf32>
        %45 = vector.shape_cast %44 : vector<1x8x512xf32> to vector<8x512xf32>
        %46 = arith.index_cast %arg8 : i32 to index
        %c0_30 = arith.constant 0 : index
        %c0_31 = arith.constant 0 : index
        %47 = vector.load %arg7[%46, %c0_30, %c0_31] : memref<4x8x1xf32, #tpu.memory_space<vmem>>, vector<1x8x1xf32>
        %48 = vector.shape_cast %47 : vector<1x8x1xf32> to vector<8x1xf32>
        %49 = arith.subf %48, %38 : vector<8x1xf32>
        %50 = math.exp %49 : vector<8x1xf32>
        %51 = arith.mulf %50, %41 : vector<8x1xf32>
        %52 = vector.broadcast %51 : vector<8x1xf32> to vector<8x512xf32>
        %53 = arith.mulf %45, %52 : vector<8x512xf32>
        %54 = arith.index_cast %arg8 : i32 to index
        %c0_32 = arith.constant 0 : index
        %c0_33 = arith.constant 0 : index
        %55 = vector.load %arg4[%54, %c0_32, %c0_33] : memref<4x8x512xf32, #tpu.memory_space<vmem>>, vector<1x8x512xf32>
        %56 = vector.shape_cast %55 : vector<1x8x512xf32> to vector<8x512xf32>
        %57 = vector.shape_cast %53 : vector<8x512xf32> to vector<1x8x512xf32>
        tpu.vector_store %arg4[%54, %c0_32, %c0_33], %57 {strides = array<i32>} : memref<4x8x512xf32, #tpu.memory_space<vmem>>, vector<1x8x512xf32>,
      }
      %c4_i32_27 = arith.constant 4 : i32
    } else {
    }
    return
  }
  func.func @transform_0(%arg0: i32) -> (i32, i32) {
    %c0_i32 = arith.constant 0 : i32
    %c0_i32_0 = arith.constant 0 : i32
    %c0_i32_1 = arith.constant 0 : i32
    return %c0_i32, %c0_i32_0 : i32, i32
  }
  func.func @transform_1(%arg0: i32) -> (i32, i32) {
    %c0_i32 = arith.constant 0 : i32
    %c0_i32_0 = arith.constant 0 : i32
    return %c0_i32, %arg0 : i32, i32
  }
  func.func @transform_2(%arg0: i32) -> (i32, i32, i32) {
    %c0_i32 = arith.constant 0 : i32
    %c0_i32_0 = arith.constant 0 : i32
    %c0_i32_1 = arith.constant 0 : i32
    %c0_i32_2 = arith.constant 0 : i32
    return %c0_i32, %c0_i32_0, %c0_i32_1 : i32, i32, i32
  }
  func.func @transform_3(%arg0: i32) -> (i32, i32, i32) {
    %c0_i32 = arith.constant 0 : i32
    %c0_i32_0 = arith.constant 0 : i32
    %c0_i32_1 = arith.constant 0 : i32
    %c0_i32_2 = arith.constant 0 : i32
    return %c0_i32, %c0_i32_0, %c0_i32_1 : i32, i32, i32
  }
}

</mosaic_0001>

<bundles_post_ra>
// kernel: skipgram_forward.1
= control target key start
LH: loop header
LB: loop body
LE: loop exit
PB: predicated region body
PF: predicated region fallthrough
CT: control target
= control target key end

     0   :  { %8 = vsyncpa [#allocation6], 0  ;;  %s1198_s0 = inlined_call_operand.vmem [shape: bf16[8,128], index: 0, kind: input, shape index: {}]   ;;  %s1199_s1 = inlined_call_operand.hbm [shape: bf16[128,2048], index: 1, kind: input, shape index: {}]   ;;  %s1200_s2 = inlined_call_operand.vmem [shape: f32[4,1,512], index: 2, kind: input, shape index: {}]   ;;  %s1201_s3 = inlined_call_operand.hbm [shape: f32[4,8,512], index: 3, kind: output, shape index: {}]  }
   0x1   :  { %10 = vsyncpa [#allocation6 + $0x1], 0 }
   0x2   :  { %11 = vsyncpa [#allocation7], 0  ;;  %s1019_s12 = smov 0   ;;  %s1021_s13 = smov 0  }
   0x3   :  { %s1023_s14 = smov 0   ;;  %s1025_s15 = smov 0  }
   0x4 LB: > { %s1038_s16 = sadd.s32 4294967295, %s983_s15   ;;  %s1041_s17 = sadd.s32 1, %s983_s15   ;;  %s983_s15 = sphi %s1025_s15, %s1208_s15   ;;  %s979_s14 = sphi %s1023_s14, %s1207_s14   ;;  %s975_s13 = sphi %s1021_s13, %s1206_s13   ;;  %s971_s12 = sphi %s1019_s12, %s1205_s12  }
   0x5   : > { %s42_s18 = ssub.s32 %s983_s15, %s1041_s17  ;;  %s45_s19 = sadd.s32 1, %s979_s14 }
   0x6   : > { %p43_p0 = scmp.eq.s32.totalorder %s42_s18, 0  ;;  %p52_p1 = scmp.ne.s32.totalorder %s979_s14, %s975_s13 }
   0x7   : > { %p53_p2 = scmp.eq.s32.totalorder %s983_s15, 0  ;;  %p58_p3 = scmp.ne.s32.totalorder %s975_s13, %s971_s12 }
   0x8   : > { %s1051_s20 = scalar_select %p43_p0, %s979_s14, %s45_s19  }
   0x9   : > { %p1053_p4 = por %p53_p2, %p52_p1  ;;  %p59_p5 = scmp.eq.s32.totalorder %s1038_s16, 0 }
   0xa   : > { %p814_p6 = scmp.lt.s32.totalorder %s983_s15, 4  ;;  %s130_s23 = sand.u32 1, %s979_s14  }
   0xb   : > { %p1059_p7 = por %p59_p5, %p58_p3  ;;  %s624_s24 = sshll.u32 %s130_s23, 8 }
   0xc   : > { %s769_s25 = sshll.u32 %s983_s15, 4  ;;  %s134_s29 = scalar_lea.vmem [#allocation5], %s624_s24 }
   0xd   : > { %s139_s28 = scalar_lea.hbm %s1199_s1, %s769_s25  ;;  %s142_s30 = sshll.u32 %s134_s29, 4  ;;  %s143_s30 = int_to_ptr.vmem [resolvable:$true] %s142_s30 }
   0xe   : > { %s140_s4 = sshll.u32 %s139_s28, 4  ;;  %p1070_p8 = pnand %p814_p6, %p1053_p4  ;;  %s141_s4 = int_to_ptr.hbm [resolvable:$true] %s140_s4 }
   0xf   : > { %s131_s6 = scalar_lea.sflag [#allocation6], %s130_s23  ;;  %s883_s7 = sshra.s32 %s141_s4, 4  ;;  %s884_s7 = int_to_ptr.hbm [resolvable:$true] %s883_s7 }
  0x10   : > { %s885_s8 = scalar_lea.hbm %s884_s7, 256  ;;  %p887_p10 = pneg %p1070_p8 }
  0x11   : > { %p886_p9 = scmp.ne.s32.totalorder %s884_s7, %s885_s8  ;;  %s890_s11 = scalar_lea.hbm %s1199_s1, 1024 }
  0x12   : > { %p891_p13 = scmp.lt.s32.totalorder %s884_s7, %s1199_s1  ;;  %p892_p0 = scmp.lt.s32.totalorder %s890_s11, %s885_s8 }
  0x13   : > { %p888_p11 = pnand %p887_p10, %p886_p9 }
  0x14   : > { %p893_p1 = por %p892_p0, %p891_p13 }
  0x15   : > { %p889_p12 = pneg %p888_p11 }
  0x17   : > { %p894_p2 = pnand %p893_p1, %p889_p12 }
  0x19   : > { %897 = shalt.err (!%p894_p2)
}
  0x1a   : > { %s989_s19 = smov 1024   ;;  %s990_s21 = smov 256  }
  0x1b   : > { %s991_s23 = smov 16   ;;  %p627_p3 = scmp.ge.s32.totalorder %s983_s15, 1 }
  0x1c   : > { %813 = dma.hbm_to_vmem [thread:$0]  (!%p1070_p8), %s141_s4, 4096, %s143_s30, %s131_s6, %s989_s19, %s990_s21, %s991_s23  }
  0x1d   : > { %p150_p4 = scmp.lt.s32.totalorder %s983_s15, 5 }
  0x1f   : > { %p151_p5 = pnand %p627_p3, %p150_p4 }
  0x20   : > { %s156_s24 = sand.u32 (!%p151_p5), 1, %s975_s13  }
  0x21   : > { %154 = sbr.rel (%p151_p5) target bundleno = 763 (0x2fb), region = 32  ;;  %s628_s25 = sshll.u32 (!%p151_p5), %s156_s24, 8 }
  0x22   : > { %s157_s26 = scalar_lea.sflag (!%p151_p5), [#allocation6], %s156_s24  ;;  %s1087_s27 = scalar_lea.vmem (!%p151_p5), [#allocation5], %s628_s25 }
  0x26   : > { %962 = dma.done.wait (%p1059_p7), %s157_s26, 4096  }
  0x27   : > { %964 = vsyncadd (%p1059_p7), %s157_s26, 4294963200  ;;  %p629_p6 = scmp.ne.s32.totalorder %s1038_s16, 0 }
  0x29   : > { %183 = sbr.rel (%p629_p6) target bundleno = 49 (0x31), region = 40 }
  0x2e   : > { %vm184_vm0 = vcmask 7168   ;;  %v992_v0 = vmov -inf   ;;  %v993_v1 = vmov 0.0  }
  0x2f   : > { %185 = vst.msk [vmem:[#allocation2] sm:$0xff] %vm184_vm0, %v992_v0 }
  0x30   : > { %186 = vst.msk [vmem:[#allocation3] sm:$0xff] %vm184_vm0, %v993_v1 }
  0x31 PF: > { %v745_v2 = vld [vmem:[%s1087_s27 + $0xe0] sm:$0xf]  ;;  %v800_v3 = vld [vmem:[%s1087_s27 + $0xec] sm:$0xf0]  ;;  %v798_v4 = vld [vmem:[%s1087_s27 + $0xe4] sm:$0xf] }
  0x32   : > { %v746_v5 = vor.u32 %v800_v3, %v745_v2  ;;  %v747_v6 = vld [vmem:[%s1087_s27 + $0xf0] sm:$0xf0]  ;;  %v753_v7 = vld [vmem:[%s1087_s27 + $0xe8] sm:$0xf]  ;;  %v801_v8 = vld [vmem:[%s1087_s27 + $0xf4] sm:$0xf0] }
  0x33   : > { %v750_v9 = vor.u32 %v798_v4, %v747_v6  ;;  %v754_v10 = vor.u32 %v801_v8, %v753_v7  ;;  %v799_v11 = vld [vmem:[%s1087_s27 + $0xec] sm:$0xf]  ;;  %v755_v12 = vld [vmem:[%s1087_s27 + $0xf8] sm:$0xf0]  ;;  %v729_v13 = vld [vmem:[%s1087_s27 + $0xc0] sm:$0xf] }
  0x34   : > { %392 = vmatpush.bf16.msra.mxu0 %v746_v5  ;;  %v758_v14 = vor.u32 %v799_v11, %v755_v12  ;;  %v796_v15 = vld [vmem:[%s1087_s27 + $0xcc] sm:$0xf0]  ;;  %v794_v16 = vld [vmem:[%s1087_s27 + $0xc4] sm:$0xf]  ;;  %v731_v17 = vld [vmem:[%s1087_s27 + $0xd0] sm:$0xf0] }
  0x35   : > { %405 = vmatpush.bf16.msra.mxu1 %v750_v9  ;;  %418 = vmatpush.bf16.msra.mxu2 %v754_v10  ;;  %v730_v18 = vor.u32 %v796_v15, %v729_v13  ;;  %v734_v19 = vor.u32 %v794_v16, %v731_v17  ;;  %v737_v20 = vld [vmem:[%s1087_s27 + $0xc8] sm:$0xf]  ;;  %v797_v21 = vld [vmem:[%s1087_s27 + $0xd4] sm:$0xf0]  ;;  %v795_v22 = vld [vmem:[%s1087_s27 + $0xcc] sm:$0xf] }
  0x36   : > { %431 = vmatpush.bf16.msra.mxu3 %v758_v14  ;;  %v738_v23 = vor.u32 %v797_v21, %v737_v20  ;;  %v739_v24 = vld [vmem:[%s1087_s27 + $0xd8] sm:$0xf0]  ;;  %v713_v25 = vld [vmem:[%s1087_s27 + $0xa0] sm:$0xf]  ;;  %v792_v26 = vld [vmem:[%s1087_s27 + $0xac] sm:$0xf0] }
  0x37   : > { %v742_v27 = vor.u32 %v795_v22, %v739_v24  ;;  %v790_v28 = vld [vmem:[%s1087_s27 + $0xa4] sm:$0xf]  ;;  %v715_v29 = vld [vmem:[%s1087_s27 + $0xb0] sm:$0xf0]  ;;  %v721_v30 = vld [vmem:[%s1087_s27 + $0xa8] sm:$0xf]  ;;  %v714_v31 = vor.u32 %v792_v26, %v713_v25 }
  0x38   : > { %393 = vmatpush.bf16.msra.mxu0 %v730_v18  ;;  %v793_v32 = vld [vmem:[%s1087_s27 + $0xb4] sm:$0xf0]  ;;  %v791_v33 = vld [vmem:[%s1087_s27 + $0xac] sm:$0xf]  ;;  %v723_v34 = vld [vmem:[%s1087_s27 + $0xb8] sm:$0xf0]  ;;  %v718_v35 = vor.u32 %v790_v28, %v715_v29 }
  0x39   : > { %406 = vmatpush.bf16.msra.mxu1 %v734_v19  ;;  %419 = vmatpush.bf16.msra.mxu2 %v738_v23  ;;  %v722_v36 = vor.u32 %v793_v32, %v721_v30  ;;  %v697_v37 = vld [vmem:[%s1087_s27 + $0x80] sm:$0xf]  ;;  %v788_v38 = vld [vmem:[%s1087_s27 + $0x8c] sm:$0xf0]  ;;  %v786_v39 = vld [vmem:[%s1087_s27 + $0x84] sm:$0xf]  ;;  %v726_v40 = vor.u32 %v791_v33, %v723_v34 }
  0x3a   : > { %432 = vmatpush.bf16.msra.mxu3 %v742_v27  ;;  %v699_v41 = vld [vmem:[%s1087_s27 + $0x90] sm:$0xf0]  ;;  %v705_v42 = vld [vmem:[%s1087_s27 + $0x88] sm:$0xf]  ;;  %v789_v43 = vld [vmem:[%s1087_s27 + $0x94] sm:$0xf0]  ;;  %v698_v46 = vor.u32 %v788_v38, %v697_v37 }
  0x3b   : > { %v787_v44 = vld [vmem:[%s1087_s27 + $0x8c] sm:$0xf]  ;;  %v707_v45 = vld [vmem:[%s1087_s27 + $0x98] sm:$0xf0]  ;;  %v702_v47 = vor.u32 %v786_v39, %v699_v41  ;;  %v706_v48 = vor.u32 %v789_v43, %v705_v42  ;;  %v681_v49 = vld [vmem:[%s1087_s27 + $0x60] sm:$0xf] }
  0x3c   : > { %394 = vmatpush.bf16.msra.mxu0 %v714_v31  ;;  %v784_v50 = vld [vmem:[%s1087_s27 + $0x6c] sm:$0xf0]  ;;  %v782_v51 = vld [vmem:[%s1087_s27 + $0x64] sm:$0xf]  ;;  %v710_v52 = vor.u32 %v787_v44, %v707_v45  ;;  %v683_v53 = vld [vmem:[%s1087_s27 + $0x70] sm:$0xf0] }
  0x3d   : > { %407 = vmatpush.bf16.msra.mxu1 %v718_v35  ;;  %420 = vmatpush.bf16.msra.mxu2 %v722_v36  ;;  %v689_v54 = vld [vmem:[%s1087_s27 + $0x68] sm:$0xf]  ;;  %v785_v55 = vld [vmem:[%s1087_s27 + $0x74] sm:$0xf0]  ;;  %v783_v56 = vld [vmem:[%s1087_s27 + $0x6c] sm:$0xf]  ;;  %v682_v58 = vor.u32 %v784_v50, %v681_v49  ;;  %v686_v59 = vor.u32 %v782_v51, %v683_v53 }
  0x3e   : > { %433 = vmatpush.bf16.msra.mxu3 %v726_v40  ;;  %v691_v57 = vld [vmem:[%s1087_s27 + $0x78] sm:$0xf0]  ;;  %v690_v60 = vor.u32 %v785_v55, %v689_v54  ;;  %v665_v61 = vld [vmem:[%s1087_s27 + $0x40] sm:$0xf]  ;;  %v780_v62 = vld [vmem:[%s1087_s27 + $0x4c] sm:$0xf0] }
  0x3f   : > { %v778_v63 = vld [vmem:[%s1087_s27 + $0x44] sm:$0xf]  ;;  %v694_v0 = vor.u32 %v783_v56, %v691_v57  ;;  %v667_v1 = vld [vmem:[%s1087_s27 + $0x50] sm:$0xf0]  ;;  %v673_v2 = vld [vmem:[%s1087_s27 + $0x48] sm:$0xf]  ;;  %v666_v6 = vor.u32 %v780_v62, %v665_v61 }
  0x40   : > { %395 = vmatpush.bf16.msra.mxu0 %v698_v46  ;;  %v781_v3 = vld [vmem:[%s1087_s27 + $0x54] sm:$0xf0]  ;;  %v779_v4 = vld [vmem:[%s1087_s27 + $0x4c] sm:$0xf]  ;;  %v675_v5 = vld [vmem:[%s1087_s27 + $0x58] sm:$0xf0]  ;;  %v670_v7 = vor.u32 %v778_v63, %v667_v1 }
  0x41   : > { %408 = vmatpush.bf16.msra.mxu1 %v702_v47  ;;  %421 = vmatpush.bf16.msra.mxu2 %v706_v48  ;;  %v674_v8 = vor.u32 %v781_v3, %v673_v2  ;;  %v649_v9 = vld [vmem:[%s1087_s27 + $0x20] sm:$0xf]  ;;  %v776_v10 = vld [vmem:[%s1087_s27 + $0x2c] sm:$0xf0]  ;;  %v774_v11 = vld [vmem:[%s1087_s27 + $0x24] sm:$0xf]  ;;  %v678_v12 = vor.u32 %v779_v4, %v675_v5 }
  0x42   : > { %434 = vmatpush.bf16.msra.mxu3 %v710_v52  ;;  %v651_v13 = vld [vmem:[%s1087_s27 + $0x30] sm:$0xf0]  ;;  %v657_v14 = vld [vmem:[%s1087_s27 + $0x28] sm:$0xf]  ;;  %v777_v15 = vld [vmem:[%s1087_s27 + $0x34] sm:$0xf0]  ;;  %v650_v18 = vor.u32 %v776_v10, %v649_v9 }
  0x43   : > { %v775_v16 = vld [vmem:[%s1087_s27 + $0x2c] sm:$0xf]  ;;  %v659_v17 = vld [vmem:[%s1087_s27 + $0x38] sm:$0xf0]  ;;  %v654_v19 = vor.u32 %v774_v11, %v651_v13  ;;  %v658_v20 = vor.u32 %v777_v15, %v657_v14  ;;  %v633_v21 = vld [vmem:[%s1087_s27] sm:$0xf] }
  0x44   : > { %396 = vmatpush.bf16.msra.mxu0 %v682_v58  ;;  %v772_v22 = vld [vmem:[%s1087_s27 + $0xc] sm:$0xf0]  ;;  %v770_v23 = vld [vmem:[%s1087_s27 + $0x4] sm:$0xf]  ;;  %v662_v24 = vor.u32 %v775_v16, %v659_v17  ;;  %v635_v25 = vld [vmem:[%s1087_s27 + $0x10] sm:$0xf0] }
  0x45   : > { %409 = vmatpush.bf16.msra.mxu1 %v686_v59  ;;  %422 = vmatpush.bf16.msra.mxu2 %v690_v60  ;;  %v641_v26 = vld [vmem:[%s1087_s27 + $0x8] sm:$0xf]  ;;  %v773_v27 = vld [vmem:[%s1087_s27 + $0x14] sm:$0xf0]  ;;  %v771_v28 = vld [vmem:[%s1087_s27 + $0xc] sm:$0xf]  ;;  %v634_v30 = vor.u32 %v772_v22, %v633_v21  ;;  %v638_v31 = vor.u32 %v770_v23, %v635_v25 }
  0x46   : > { %435 = vmatpush.bf16.msra.mxu3 %v694_v0  ;;  %v643_v29 = vld [vmem:[%s1087_s27 + $0x18] sm:$0xf0]  ;;  %v642_v32 = vor.u32 %v773_v27, %v641_v26  ;;  %v187_v34 = vld [vmem:[%s1198_s0] sm:$0xf]  ;;  %s630_s28 = sshll.u32 %s1038_s16, 2  ;;  %v994_v55 = vmov 0  }
  0x47   : > { %v646_v33 = vor.u32 %v771_v28, %v643_v29  ;;  %s221_s4 = scalar_lea.vmem %s1200_s2, %s630_s28  ;;  %867 = vset.pattern.permute.xlu0 %v994_v55  ;;  %v444_v56 = vld [vmem:[#allocation2] sm:$0xff]  ;;  %s759_s5 = sshll.u32 %s1038_s16, 3  ;;  %vm479_vm1 = vcmask 7168   ;;  %v468_v14 = vld [vmem:[#allocation3] sm:$0xff] }
  0x48   : > { %397 = vmatpush.bf16.msra.mxu0 %v666_v6  ;;  %v222_v35 = vld [vmem:[%s221_s4] sm:$0xf]  ;;  %s483_s6 = scalar_lea.vmem [#allocation4], %s759_s5  ;;  %s802_s7 = sshll.u32 %s1038_s16, 5 }
  0x49   : > { %410 = vmatpush.bf16.msra.mxu1 %v670_v7  ;;  %423 = vmatpush.bf16.msra.mxu2 %v674_v8  ;;  %v224_v37 = vperm.slane %v222_v35, 0  ;;  %v225_v38 = vperm.slane %v222_v35, 1  ;;  %v226_v40 = vperm.slane %v222_v35, 2  ;;  %v227_v43 = vperm.slane %v222_v35, 3  ;;  %s486_s8 = scalar_lea.vmem [#allocation8], %s802_s7  ;;  %p761_p7 = scmp.ne.s32.totalorder %s1038_s16, 3 }
  0x4a   : > { %436 = vmatpush.bf16.msra.mxu3 %v678_v12  ;;  %s1171_s9 = smov (!%p761_p7), 0  }
  0x4c   : > { %398 = vmatpush.bf16.msra.mxu0 %v650_v18 }
  0x4d   : > { %411 = vmatpush.bf16.msra.mxu1 %v654_v19  ;;  %424 = vmatpush.bf16.msra.mxu2 %v658_v20 }
  0x4e   : > { %437 = vmatpush.bf16.msra.mxu3 %v662_v24 }
  0x50   : > { %399 = vmatpush.bf16.msra.mxu0 %v634_v30 }
  0x51   : > { %412 = vmatpush.bf16.msra.mxu1 %v638_v31  ;;  %425 = vmatpush.bf16.msra.mxu2 %v642_v32 }
  0x52   : > { %438 = vmatpush.bf16.msra.mxu3 %v646_v33 }
  0x53   : > { %400 = vmatmul.bf16.vlgmr.msra.gmra.mxu0 %v187_v34 }
  0x54   : > { %413 = vmatmul.bf16.vlgmr.msra.gmra.mxu1 %v187_v34  ;;  %426 = vmatmul.bf16.vlgmr.msra.gmra.mxu2 %v187_v34 }
  0x55   : > { %439 = vmatmul.bf16.vlgmr.msra.gmra.mxu3 %v187_v34 }
  0xd0   : > { %v401_v36 = vpop.f32.mrf.mxu0 }
  0xd1   : > { %v414_v39 = vpop.f32.mrf.mxu1  ;;  %v402_v41 = vadd.f32 %v401_v36, %v224_v37 }
  0xd2   : > { %v415_v42 = vadd.f32 %v414_v39, %v225_v38 }
  0xd4   : > { %v445_v50 = vmax.f32 %v402_v41, %v415_v42 }
  0xd7   : > { %v427_v44 = vpop.f32.mrf.mxu2 }
  0xd8   : > { %v428_v45 = vadd.f32 %v427_v44, %v226_v40  ;;  %v440_v46 = vpop.f32.mrf.mxu3  ;;  %v403_v47 = vpop.f32.mrf.mxu0 }
  0xd9   : > { %v441_v48 = vadd.f32 %v440_v46, %v227_v43  ;;  %v416_v49 = vpop.f32.mrf.mxu1 }
  0xdb   : > { %v446_v51 = vmax.f32 %v428_v45, %v441_v48 }
  0xdd   : > { %v447_v52 = vmax.f32 %v445_v50, %v446_v51 }
  0xdf   : > { %448 = vmax.xlane.f32.xlu0 %v447_v52  ;;  %v429_v53 = vpop.f32.mrf.mxu2 }
  0xe0   : > { %v442_v54 = vpop.f32.mrf.mxu3 }
 0x152   : > { %v449_v57 = vpop.xlane.xlu0 %448 }
 0x153   : > { %v450_v58 = vmax.f32 %v444_v56, %v449_v57 }
 0x155   : > { %v469_v59 = vsub.f32 %v444_v56, %v450_v58  ;;  %481 = vst.msk [vmem:[#allocation2] sm:$0xff] %vm479_vm1, %v450_v58  ;;  %453 = vperm.xlu0 %867, %v450_v58  }
 0x156   : > { %484 = vst.msk [vmem:[%s483_s6] sm:$0xff] %vm479_vm1, %v450_v58 }
 0x157   : > { %v470_v12 = vmul.f32 1.442695, %v469_v59 }
 0x1c7   : > { %v454_v60 = vpop.permute.xlu0 %453 }
 0x1c8   : > { %v456_v61 = vsub.f32 %v402_v41, %v454_v60  ;;  %v457_v62 = vsub.f32 %v415_v42, %v454_v60  ;;  %v458_v63 = vsub.f32 %v428_v45, %v454_v60  ;;  %v459_v0 = vsub.f32 %v441_v48, %v454_v60 }
 0x1ca   : > { %v460_v1 = vmul.f32 1.442695, %v456_v61  ;;  %v462_v2 = vmul.f32 1.442695, %v457_v62  ;;  %v464_v3 = vmul.f32 1.442695, %v458_v63 }
 0x1cb   : > { %v466_v4 = vmul.f32 1.442695, %v459_v0 }
 0x1cc   : > { %868 = vpow2.f32 %v460_v1 }
 0x1cd   : > { %870 = vpow2.f32 %v462_v2 }
 0x1ce   : > { %872 = vpow2.f32 %v464_v3 }
 0x1cf   : > { %874 = vpow2.f32 %v466_v4 }
 0x1d0   : > { %876 = vpow2.f32 %v470_v12 }
 0x1d2   : > { %v869_v5 = vpop.eup %868 }
 0x1d3   : > { %v871_v6 = vpop.eup %870  ;;  %487 = vst [vmem:[%s486_s8] sm:$0xff] %v869_v5 }
 0x1d4   : > { %v873_v7 = vpop.eup %872  ;;  %488 = vst [vmem:[%s486_s8 + $0x8] sm:$0xff] %v871_v6  ;;  %v473_v8 = vadd.f32 %v871_v6, %v869_v5 }
 0x1d5   : > { %v875_v9 = vpop.eup %874  ;;  %489 = vst [vmem:[%s486_s8 + $0x10] sm:$0xff] %v873_v7 }
 0x1d6   : > { %490 = vst [vmem:[%s486_s8 + $0x18] sm:$0xff] %v875_v9  ;;  %v474_v10 = vadd.f32 %v873_v7, %v473_v8  ;;  %v877_v13 = vpop.eup %876 }
 0x1d7   : > { %v472_v15 = vmul.f32 %v877_v13, %v468_v14 }
 0x1d8   : > { %v475_v11 = vadd.f32 %v875_v9, %v474_v10 }
 0x1da   : > { %476 = vadd.xlane.f32.xlu1 %v475_v11 }
 0x24c   : > { %494 = sbr.rel (%p761_p7) target bundleno = 757 (0x2f5), region = 44 }
 0x24d   : > { %v477_v16 = vpop.xlane.xlu1 %476 }
 0x24e   : > { %v478_v17 = vadd.f32 %v477_v16, %v472_v15 }
 0x250   : > { %480 = vst.msk [vmem:[#allocation3] sm:$0xff] %vm479_vm1, %v478_v17 }
 0x251   : > { %v495_v18 = vld [vmem:[#allocation2] sm:$0xff] }
 0x257   : > { %v496_v19 = vld [vmem:[#allocation3] sm:$0xff] }
 0x258   : > { %878 = vrcp.f32 %v496_v19  ;;  %v508_v22 = vand.u32 2147483648, %v496_v19  ;;  %vm502_vm2 = vweird.f32 %v496_v19  ;;  %v506_v24 = vand.u32 2147483647, %v496_v19 }
 0x25a   : > { %v509_v26 = vor.u32 1.1754944e-38, %v508_v22  ;;  %vm507_vm5 = vcmp.eq.f32.partialorder %v506_v24, 8.507059e+37 }
 0x25e   : > { %v879_v20 = vpop.eup %878 }
 0x25f   : > { %v498_v21 = vmul.f32 %v879_v20, %v496_v19  ;;  %vm503_vm3 = vweird.f32 %v879_v20 }
 0x260   : > { %vm504_vm4 = vmor %vm502_vm2, %vm503_vm3 }
 0x261   : > { %v499_v23 = vsub.f32 1.0, %v498_v21 }
 0x263   : > { %v500_v25 = vmul.f32 %v879_v20, %v499_v23 }
 0x265   : > { %v501_v27 = vadd.f32 %v879_v20, %v500_v25 }
 0x267   : > { %v505_v28 = vsel %vm504_vm4, %v879_v20, %v501_v27 }
 0x268   : > { %v510_v29 = vsel %vm507_vm5, %v509_v26, %v505_v28 }
 0x269 LB: >> { %v995_v30 = vmov 0   ;;  %s764_s10 = sshll.u32 %s987_s9, 3  ;;  %s803_s12 = sshll.u32 %s987_s9, 5  ;;  %s987_s9 = sphi %s1171_s9, %s517_s9  }
 0x26a   : >> { %880 = vset.pattern.permute.xlu0 %v995_v30  ;;  %s526_s11 = scalar_lea.vmem [#allocation4], %s764_s10  ;;  %s520_s18 = scalar_lea.vmem [#allocation8], %s803_s12 }
 0x26b   : >> { %v527_v31 = vld [vmem:[%s526_s11] sm:$0xff]  ;;  %v522_v37 = vld [vmem:[%s520_s18 + $0x8] sm:$0xff]  ;;  %v523_v38 = vld [vmem:[%s520_s18 + $0x10] sm:$0xff]  ;;  %s517_s9 = sadd.s32 1, %s987_s9  }
 0x26c   : >> { %v528_v32 = vsub.f32 %v527_v31, %v495_v18  ;;  %v521_v36 = vld [vmem:[%s520_s18] sm:$0xff]  ;;  %v524_v39 = vld [vmem:[%s520_s18 + $0x18] sm:$0xff]  ;;  %p514_p8 = scmp.ge.s32.totalorder %s517_s9, 4  }
 0x26e   : >> { %v529_v33 = vmul.f32 1.442695, %v528_v32 }
 0x270   : >> { %881 = vpow2.f32 %v529_v33 }
 0x276   : >> { %v882_v34 = vpop.eup %881 }
 0x277   : >> { %v531_v35 = vmul.f32 %v882_v34, %v510_v29 }
 0x279   : >> { %534 = vperm.xlu0 %880, %v531_v35  }
 0x2eb   : >> { %v535_v40 = vpop.permute.xlu0 %534 }
 0x2ec   : >> { %v537_v41 = vmul.f32 %v535_v40, %v521_v36  ;;  %v538_v42 = vmul.f32 %v535_v40, %v522_v37  ;;  %v539_v43 = vmul.f32 %v535_v40, %v523_v38  ;;  %v540_v44 = vmul.f32 %v535_v40, %v524_v39 }
 0x2ee   : >> { %541 = vst [vmem:[%s520_s18] sm:$0xff] %v537_v41 }
 0x2ef   : >> { %542 = vst [vmem:[%s520_s18 + $0x8] sm:$0xff] %v538_v42 }
 0x2f0   : >> { %543 = vst [vmem:[%s520_s18 + $0x10] sm:$0xff] %v539_v43  ;;  %516 = sbr.rel (!%p514_p8) target bundleno = 617 (0x269), region = 89 }
 0x2f1   : >> { %544 = vst [vmem:[%s520_s18 + $0x18] sm:$0xff] %v540_v44 }
 0x2f5 PF: > { %p815_p9 = scmp.eq.s32.totalorder %s1038_s16, 3  ;;  %s996_s19 = smov [#allocation8]  }
 0x2f6   : > { %s550_s21 = sshll.u32 %s996_s19, 4  ;;  %s552_s25 = sshll.u32 %s1201_s3, 4  ;;  %s551_s21 = int_to_ptr.vmem [resolvable:$true] %s550_s21  ;;  %s553_s25 = int_to_ptr.hbm [resolvable:$true] %s552_s25 }
 0x2f7   : > { %s997_s26 = smov 512   ;;  %s998_s27 = smov 32  }
 0x2f8   : > { %807 = dma.vmem_to_hbm [thread:$0]  (%p815_p9), %s551_s21, 2048, %s553_s25, [#allocation7], %s997_s26, %s997_s26, %s998_s27  }
 0x2f9   : > { %966 = dma.done.wait (%p815_p9), [#allocation7], 2048  }
 0x2fa   : > { %968 = vsyncadd (%p815_p9), [#allocation7], 4294965248 }
 0x2fb PF: > { %p14_p10 = scmp.ge.s32.totalorder %s1041_s17, 6   ;;  %s1205_s12 = smov %s975_s13 }
 0x2fc   : > { %s1206_s13 = smov %s979_s14  ;;  %s1207_s14 = smov %s1051_s20 }
 0x2fd   : > { %s1208_s15 = smov %s1041_s17  ;;  %16 = sbr.rel (!%p14_p10) target bundleno = 4 (0x4), region = 100 }
 0x302   :  { %569 = vsyncpa [#allocation6], 1 }
 0x303   :  { %571 = vsyncpa [#allocation6 + $0x1], 1 }
 0x304   :  { %572 = vsyncpa [#allocation7], 1 }
 0x305   :  { %574 = vsyncpa [#allocation7 + $0x1], 1 }

</bundles_post_ra>
